<compile_context>
chip_gen: v7x
topology: tpu7x:2x2x1
jax: 0.10.0
libtpu: 0.0.40
codegen_flags: <defaults>
</compile_context>

<pallas_src>
import math
import functools

import jax
import jax.numpy as jnp
from jax.experimental import pallas as pl
from jax.experimental.pallas import tpu as pltpu


def _make_pe_table(d_model: int, max_len: int) -> jnp.ndarray:
    """Same construction as the PyTorch __init__ (deterministic, no params)."""
    position = jnp.arange(max_len, dtype=jnp.float32)[:, None]              # (L, 1)
    div_term = jnp.exp(
        jnp.arange(0, d_model, 2, dtype=jnp.float32) * (-math.log(10000.0) / d_model)
    )                                                                       # (D/2,)
    ang = position * div_term                                               # (L, D/2)
    pe = jnp.zeros((max_len, d_model), dtype=jnp.float32)
    pe = pe.at[:, 0::2].set(jnp.sin(ang))
    pe = pe.at[:, 1::2].set(jnp.cos(ang))
    return pe[:, None, :]                                                   # (L, 1, D)


def _pick_seq_tile(seq_len: int, row_bytes: int, target_bytes: int = 2 << 20) -> int:
    """Largest multiple-of-8 divisor of seq_len with tile <= ~2 MiB (else full S)."""
    cap = max(1, min(seq_len, target_bytes // max(row_bytes, 1)))
    best = None
    for ts in range(8, cap + 1, 8):
        if seq_len % ts == 0:
            best = ts
    if best is None:
        best = seq_len          # full-extent block is always layout-legal
    return best


def _pos_enc_kernel(seed_ref, x_ref, pe_ref, o_ref, pe_wide_ref, *,
                    batch, d_model, p, training, use_tpu_prng):
    # x_ref / o_ref: (ts, B*D) lane-dense; pe_ref: (ts, D); pe_wide_ref: VMEM scratch (ts, B*D)
    ts, bd = x_ref.shape

    # Widen pe across batch with static slice stores (no tile/reshape lane games,
    # no per-batch HBM read of the pe table).
    pe_blk = pe_ref[...]
    for b in range(batch):
        pe_wide_ref[:, b * d_model:(b + 1) * d_model] = pe_blk

    y = x_ref[...] + pe_wide_ref[...]          # dense VPU add over the full (ts, B*D) slab

    if training and p > 0.0:
        keep_prob = 1.0 - p
        if keep_prob <= 0.0:                   # degenerate p >= 1: everything dropped
            o_ref[...] = jnp.zeros((ts, bd), o_ref.dtype)
            return

        # 31-bit integer threshold compare (no float construction of uniforms).
        thresh31 = min(int(round(keep_prob * float(1 << 31))), (1 << 31) - 1)

        if use_tpu_prng:
            # Hardware PRNG; (seed, program_id) folded in separately so streams
            # from different calls / grid steps never overlap additively.
            pltpu.prng_seed(seed_ref[0], pl.program_id(0))
            raw = pltpu.prng_random_bits((ts, bd))
            if raw.dtype != jnp.int32:
                raw = pltpu.bitcast(raw, jnp.int32)
        else:
            # Portable counter-based hash (splitmix32-style) — only used when the
            # backend is not TPU (e.g. CPU / interpret mode), where pltpu.prng_*
            # has no lowering.  Pure int ops, runs everywhere.
            row = jax.lax.broadcasted_iota(jnp.uint32, (ts, bd), 0)
            col = jax.lax.broadcasted_iota(jnp.uint32, (ts, bd), 1)
            base = (pl.program_id(0) * ts).astype(jnp.uint32)
            idx = (row + base) * jnp.uint32(bd) + col
            h = idx ^ (seed_ref[0].astype(jnp.uint32) * jnp.uint32(0x9E3779B9))
            h = (h ^ (h >> 16)) * jnp.uint32(0x7FEB352D)
            h = (h ^ (h >> 15)) * jnp.uint32(0x846CA68B)
            h = h ^ (h >> 16)
            raw = (h >> 1).astype(jnp.int32)

        r31 = jnp.bitwise_and(raw, jnp.int32(0x7FFFFFFF))
        keep = r31 < jnp.int32(thresh31)
        y = jnp.where(keep, y * (1.0 / keep_prob), jnp.zeros_like(y))

    o_ref[...] = y.astype(o_ref.dtype)


def positional_encoding(x, pe, *, p=0.1, training=False, seed=0, seq_tile=None):
    """x: (S, B, D); pe: (max_len, 1, D); returns (S, B, D) = dropout(x + pe[:S])."""
    S, B, D = x.shape
    assert pe.shape[0] >= S and pe.shape[-1] == D
    BD = B * D

    # Lane-dense 2D views (metadata-only reshapes; x is contiguous over (B, D)).
    x2d = x.reshape(S, BD)
    pe2d = pe[:S].reshape(S, D)

    ts = _pick_seq_tile(S, BD * x.dtype.itemsize) if seq_tile is None else seq_tile
    assert S % ts == 0, "seq_tile must divide seq_len"

    seed_arr = jnp.asarray([seed], dtype=jnp.int32)
    use_tpu_prng = jax.default_backend() == "tpu"

    kernel = functools.partial(
        _pos_enc_kernel,
        batch=B, d_model=D, p=float(p), training=bool(training),
        use_tpu_prng=use_tpu_prng)

    grid_spec = pltpu.PrefetchScalarGridSpec(
        num_scalar_prefetch=1,                                   # seed -> SMEM
        grid=(S // ts,),
        in_specs=[
            pl.BlockSpec((ts, BD), lambda i, seed: (i, 0)),      # x (lane-dense)
            pl.BlockSpec((ts, D), lambda i, seed: (i, 0)),       # pe (small stream)
        ],
        out_specs=pl.BlockSpec((ts, BD), lambda i, seed: (i, 0)),
        scratch_shapes=[pltpu.VMEM((ts, BD), pe2d.dtype)],       # widened pe
    )

    # NOTE: if the caller never reuses x, input_output_aliases={1: 0} would let
    # the output reuse x's HBM buffer; left off because aliasing is unsafe to
    # assume in a generic module wrapper.
    out2d = pl.pallas_call(
        kernel,
        out_shape=jax.ShapeDtypeStruct((S, BD), x.dtype),
        grid_spec=grid_spec,
        compiler_params=pltpu.CompilerParams(
            dimension_semantics=("parallel",),                   # independent steps (v7x 2 TCs)
            vmem_limit_bytes=32 * 1024 * 1024,                   # explicit budget, all gens
        ),
    )(seed_arr, x2d, pe2d)

    return out2d.reshape(S, B, D)


if __name__ == "__main__":
    d_model = 32
    max_len = 2400
    seq_len = 8
    batch = 2

    key = jax.random.PRNGKey(0)
    x = jax.random.normal(key, (seq_len, batch, d_model), dtype=jnp.float32)
    pe = _make_pe_table(d_model, max_len)

    # Eval mode (dropout is identity) -> exact semantics of x + pe[:S].
    out_eval = positional_encoding(x, pe, p=0.1, training=False)
    out_eval = jax.block_until_ready(out_eval)
    ref = x + pe[:seq_len]
    assert out_eval.shape == (seq_len, batch, d_model)
    assert jnp.allclose(out_eval, ref, atol=1e-6), "eval-mode mismatch"

    # Training mode (inverted dropout): every element is 0 or (x+pe)/(1-p).
    out_train = positional_encoding(x, pe, p=0.1, training=True, seed=1234)
    out_train = jax.block_until_ready(out_train)
    assert out_train.shape == (seq_len, batch, d_model)
    scaled = ref / (1.0 - 0.1)
    ok = jnp.logical_or(jnp.isclose(out_train, scaled, atol=1e-5, rtol=1e-5),
                        out_train == 0.0)
    assert bool(jnp.all(ok)), "dropout-mode values inconsistent"

    print("KERNEL_OK")
</pallas_src>

<mosaic_0001>
module attributes {stable_mosaic.version = 11 : i64} {
  func.func @_pos_enc_kernel(%arg0: i32, %arg1: memref<1xi32, #tpu.memory_space<smem>>, %arg2: memref<8x64xf32, #tpu.memory_space<vmem>>, %arg3: memref<8x32xf32, #tpu.memory_space<vmem>>, %arg4: memref<8x64xf32, #tpu.memory_space<vmem>>, %arg5: memref<8x64xf32, #tpu.memory_space<vmem>>) attributes {dimension_semantics = [#tpu.dimension_semantics<parallel>], iteration_bounds = array<i64: 1>, scalar_prefetch = 1 : i64, scratch_operands = 1 : i64, tpu.core_type = #tpu.core_type<tc>, window_params = [{transform_indices = @transform_0, window_bounds = array<i64: 8, 64>}, {transform_indices = @transform_1, window_bounds = array<i64: 8, 32>}, {transform_indices = @transform_2, window_bounds = array<i64: 8, 64>}]} {
    %c0 = arith.constant 0 : index
    %c0_0 = arith.constant 0 : index
    %0 = vector.load %arg3[%c0, %c0_0] : memref<8x32xf32, #tpu.memory_space<vmem>>, vector<8x32xf32>
    %c0_1 = arith.constant 0 : index
    %c0_2 = arith.constant 0 : index
    %1 = vector.load %arg5[%c0_1, %c0_2] : memref<8x64xf32, #tpu.memory_space<vmem>>, vector<8x32xf32>
    tpu.vector_store %arg5[%c0_1, %c0_2], %0 {strides = array<i32>} : memref<8x64xf32, #tpu.memory_space<vmem>>, vector<8x32xf32>,
    %c0_3 = arith.constant 0 : index
    %c32 = arith.constant 32 : index
    %2 = vector.load %arg5[%c0_3, %c32] : memref<8x64xf32, #tpu.memory_space<vmem>>, vector<8x32xf32>
    tpu.vector_store %arg5[%c0_3, %c32], %0 {strides = array<i32>} : memref<8x64xf32, #tpu.memory_space<vmem>>, vector<8x32xf32>,
    %c0_4 = arith.constant 0 : index
    %c0_5 = arith.constant 0 : index
    %3 = vector.load %arg2[%c0_4, %c0_5] : memref<8x64xf32, #tpu.memory_space<vmem>>, vector<8x64xf32>
    %c0_6 = arith.constant 0 : index
    %c0_7 = arith.constant 0 : index
    %4 = vector.load %arg5[%c0_6, %c0_7] : memref<8x64xf32, #tpu.memory_space<vmem>>, vector<8x64xf32>
    %5 = arith.addf %3, %4 : vector<8x64xf32>
    %c0_8 = arith.constant 0 : index
    %c0_9 = arith.constant 0 : index
    %6 = vector.load %arg4[%c0_8, %c0_9] : memref<8x64xf32, #tpu.memory_space<vmem>>, vector<8x64xf32>
    tpu.vector_store %arg4[%c0_8, %c0_9], %5 {strides = array<i32>} : memref<8x64xf32, #tpu.memory_space<vmem>>, vector<8x64xf32>,
    return
  }
  func.func @transform_0(%arg0: i32, %arg1: memref<1xi32, #tpu.memory_space<smem>>) -> (i32, i32) {
    %c0_i32 = arith.constant 0 : i32
    %c0_i32_0 = arith.constant 0 : i32
    return %arg0, %c0_i32 : i32, i32
  }
  func.func @transform_1(%arg0: i32, %arg1: memref<1xi32, #tpu.memory_space<smem>>) -> (i32, i32) {
    %c0_i32 = arith.constant 0 : i32
    %c0_i32_0 = arith.constant 0 : i32
    return %arg0, %c0_i32 : i32, i32
  }
  func.func @transform_2(%arg0: i32, %arg1: memref<1xi32, #tpu.memory_space<smem>>) -> (i32, i32) {
    %c0_i32 = arith.constant 0 : i32
    %c0_i32_0 = arith.constant 0 : i32
    return %arg0, %c0_i32 : i32, i32
  }
}

</mosaic_0001>

<bundles_post_ra>
// kernel: tpu_custom_call.1
= control target key start
LH: loop header
LB: loop body
LE: loop exit
PB: predicated region body
PF: predicated region fallthrough
CT: control target
= control target key end

     0   :  { %9 = vsyncpa [#allocation6], 0  ;;  %s204_s0 = inlined_call_operand.<no memory space> [shape: s32[1], index: 0, kind: input, shape index: {}]   ;;  %s205_s1 = inlined_call_operand.hbm [shape: f32[8,64], index: 1, kind: input, shape index: {}]   ;;  %s206_s2 = inlined_call_operand.hbm [shape: f32[8,32], index: 2, kind: input, shape index: {}]   ;;  %s207_s3 = inlined_call_operand.hbm [shape: f32[8,64], index: 3, kind: output, shape index: {}]  }
   0x1   :  { %10 = vsyncpa [#allocation9], 0 }
   0x2   :  { %11 = vsyncpa [#allocation7], 0  ;;  %s144_s12 = smov [#allocation5]   ;;  %s145_s14 = smov [#allocation8]  }
   0x3   :  { %s18_s13 = sshll.u32 %s144_s12, 4  ;;  %s28_s15 = sshll.u32 %s145_s14, 4  ;;  %s19_s13 = int_to_ptr.vmem [resolvable:$true] %s18_s13  ;;  %s29_s15 = int_to_ptr.vmem [resolvable:$true] %s28_s15 }
   0x4   :  { %s72_s17 = scalar_lea.hbm %s205_s1, 128 }
   0x5   :  { %p73_p0 = scmp.ne.s32.totalorder %s205_s1, %s72_s17  ;;  %p76_p1 = scmp.lt.u32.totalorder %s72_s17, %s205_s1 }
   0x7   :  { %p78_p2 = pnand %p76_p1, %p73_p0 }
   0x9   :  { %81 = shalt.err (!%p78_p2)
}
   0xa   :  { %s82_s22 = scalar_lea.vmem %s19_s13, 128  ;;  %p87_p4 = scmp.lt.s32.totalorder %s19_s13, %s19_s13 }
   0xb   :  { %p83_p3 = scmp.ne.s32.totalorder %s19_s13, %s82_s22  ;;  %p88_p5 = scmp.lt.s32.totalorder %s82_s22, %s82_s22 }
   0xd   :  { %p89_p6 = por %p88_p5, %p87_p4 }
   0xf   :  { %p90_p7 = pnand %p89_p6, %p83_p3 }
  0x11   :  { %93 = shalt.err (!%p90_p7)
}
  0x12   :  { %21 = dma.hbm_to_vmem [thread:$0]  %s205_s1, 128, %s19_s13, [#allocation6]  }
  0x13   :  { %s94_s27 = scalar_lea.hbm %s206_s2, 128 }
  0x14   :  { %p95_p8 = scmp.ne.s32.totalorder %s206_s2, %s94_s27  ;;  %p98_p9 = scmp.lt.u32.totalorder %s94_s27, %s206_s2 }
  0x16   :  { %p100_p10 = pnand %p98_p9, %p95_p8 }
  0x18   :  { %103 = shalt.err (!%p100_p10)
}
  0x19   :  { %s104_s5 = scalar_lea.vmem %s29_s15, 128  ;;  %p109_p12 = scmp.lt.s32.totalorder %s29_s15, %s29_s15 }
  0x1a   :  { %p105_p11 = scmp.ne.s32.totalorder %s29_s15, %s104_s5  ;;  %p110_p13 = scmp.lt.s32.totalorder %s104_s5, %s104_s5 }
  0x1c   :  { %p111_p0 = por %p110_p13, %p109_p12 }
  0x1e   :  { %p112_p1 = pnand %p111_p0, %p105_p11 }
  0x20   :  { %115 = shalt.err (!%p112_p1)
}
  0x21   :  { %31 = dma.hbm_to_vmem [thread:$0]  %s206_s2, 128, %s29_s15, [#allocation9]  }
  0x22   :  { %138 = dma.done.wait [#allocation6], 128  }
  0x23   :  { %139 = vsyncadd [#allocation6], 4294967168 }
  0x24   :  { %140 = dma.done.wait [#allocation9], 128  }
  0x25   :  { %141 = vsyncadd [#allocation9], 4294967168  ;;  %vm39_vm0 = vcmask 261120   ;;  %v38_v0 = vld [vmem:[#allocation8] sm:$0xff]  ;;  %s146_s7 = smov 32   ;;  %vm45_vm1 = vcmask 523520  }
  0x26   :  { %40 = vst.msk [vmem:[#allocation2] sm:$0xff] %vm39_vm0, %v38_v0  ;;  %42 = vrot.lane.b32.xlu0 %v38_v0, %s146_s7  ;;  %v47_v2 = vld [vmem:[#allocation5] sm:$0xff]  ;;  %s147_s8 = smov [#allocation10]   ;;  %vm50_vm2 = vcmask 523264  }
  0x27   :  { %s58_s9 = sshll.u32 %s147_s8, 4  ;;  %s59_s9 = int_to_ptr.vmem [resolvable:$true] %s58_s9 }
  0x28   :  { %s116_s2 = scalar_lea.vmem %s59_s9, 128  ;;  %p121_p3 = scmp.lt.s32.totalorder %s59_s9, %s59_s9 }
  0x29   :  { %p117_p2 = scmp.ne.s32.totalorder %s59_s9, %s116_s2  ;;  %p122_p4 = scmp.lt.s32.totalorder %s116_s2, %s116_s2 }
  0x2b   :  { %p123_p5 = por %p122_p4, %p121_p3 }
  0x2d   :  { %p124_p6 = pnand %p123_p5, %p117_p2 }
  0x98   :  { %v43_v1 = vpop.permute.xlu0 %42 }
  0x99   :  { %46 = vst.msk [vmem:[#allocation2] sm:$0xff] %vm45_vm1, %v43_v1 }
  0xa0   :  { %v48_v3 = vld [vmem:[#allocation2] sm:$0xff] }
  0xa1   :  { %v49_v4 = vadd.f32 %v48_v3, %v47_v2 }
  0xa3   :  { %51 = vst.msk [vmem:[#allocation10] sm:$0xff] %vm50_vm2, %v49_v4 }
  0xa4   :  { %127 = shalt.err (!%p124_p6)
}
  0xa5   :  { %s128_s12 = scalar_lea.hbm %s207_s3, 128 }
  0xa6   :  { %p129_p7 = scmp.ne.s32.totalorder %s207_s3, %s128_s12  ;;  %p132_p8 = scmp.lt.u32.totalorder %s128_s12, %s207_s3 }
  0xa8   :  { %p134_p9 = pnand %p132_p8, %p129_p7 }
  0xaa   :  { %137 = shalt.err (!%p134_p9)
}
  0xab   :  { %61 = dma.vmem_to_hbm [thread:$0]  %s59_s9, 128, %s207_s3, [#allocation7]  }
  0xac   :  { %142 = dma.done.wait [#allocation7], 128  }
  0xad   :  { %143 = vsyncadd [#allocation7], 4294967168 }
  0xae   :  { %65 = vsyncpa [#allocation6], 1 }
  0xaf   :  { %66 = vsyncpa [#allocation9], 1 }
  0xb0   :  { %67 = vsyncpa [#allocation7], 1 }

</bundles_post_ra>
